<compile_context>
chip_gen: v7x
topology: tpu7x:2x2x1
jax: 0.10.0
libtpu: 0.0.40
codegen_flags: <defaults>
</compile_context>

<pallas_src>
import jax
import jax.numpy as jnp
from jax.experimental import pallas as pl
from jax.experimental.pallas import tpu as pltpu

# ----------------------- synthetic config (small shapes) -----------------------
BATCH = 2
SEQ = 8            # token sequence length
PSL = 4            # prompt sequence length (prompt_mode == 'prompt')
HIDDEN = 32        # logical config.hidden_size
VOCAB = 100
TYPE_VOCAB = 2
MAX_POS = 64
NUM_TASKS = 2
LABELS_PER_TASK = 3
NUM_LABELS = NUM_TASKS * LABELS_PER_TASK          # classifier grows per new_task()

LANE = 128         # TPU lane width
H_PAD = 128        # hidden padded to lane width (zero-padded; numerics unchanged)
L_PAD = 128        # label axis padded to lane width (masked to NEG in-kernel)
BS_PAD = 8         # batch padded to a full sublane tile for unmasked stores
NEG = -10000.0

TASK_STARTS = jnp.array([i * LABELS_PER_TASK for i in range(NUM_TASKS)], jnp.int32)
TASK_ENDS = TASK_STARTS + LABELS_PER_TASK

# TODO(synk): the pretrained transformer backbone (multi-head attention, N layers,
# prefix mode / past_key_values) has no checkpoint here; it is replaced by a synthetic
# token-wise dense+tanh encoder layer.  With a real attention backbone the per-task
# prompts change h, and the per-task encoder pass must come back.

# TODO(synk): at realistic hidden sizes (768+) cast enc_w/cls_w + dot operands to
# bfloat16 at the MXU boundary (f32 accumulation), and add K/N grid tiling with an
# explicit vmem_limit_bytes for v7x's 64 MiB VMEM; pointless at HIDDEN=32.


# ----------------------- fused Pallas kernel (single grid point) -----------------------
# encoder dense+tanh -> masked mean pool (VPU reduce) -> classifier (once)
#   -> per-task label-range mask + max-softmax-probability (statically unrolled).
# task_starts / task_ends arrive via scalar prefetch (SMEM).

def _msp_fused_kernel(starts_ref, ends_ref,                    # scalar prefetch (SMEM)
                      raw_ref, enc_w_ref, enc_b_ref, poolw_ref,
                      cls_w_ref, cls_b_ref,
                      logits_ref, pooled_ref, msp_ref):
    bs, sl = poolw_ref.shape
    hp = raw_ref.shape[1]
    nt = logits_ref.shape[0]

    # ---- synthetic backbone hot path: ONE token-wise dense + tanh over all tokens ----
    h = jnp.tanh(
        jnp.dot(raw_ref[...], enc_w_ref[...], preferred_element_type=jnp.float32)
        + enc_b_ref[...])                                      # (bs*sl, H_PAD)

    # ---- masked mean pooling (rep_mode='avg'): VPU multiply + sublane reduce ----
    # mask/count already folded into the (bs, sl) weights; no quadratic pool matrix.
    h3 = h.reshape(bs, sl, hp)
    w3 = poolw_ref[...][:, :, None]                            # (bs, sl, 1)
    pooled = jnp.sum(h3 * w3, axis=1)                          # (bs, H_PAD)
    if bs < BS_PAD:                                            # pad to full sublane tile
        pooled_full = jnp.concatenate(
            [pooled, jnp.zeros((BS_PAD - bs, hp), jnp.float32)], axis=0)
    else:
        pooled_full = pooled
    pooled_ref[...] = pooled_full                              # unmasked (8,128) store

    # ---- classifier: task-independent pre-mask logits, computed ONCE ----
    base_logits = (jnp.dot(pooled_full, cls_w_ref[...],
                           preferred_element_type=jnp.float32)
                   + cls_b_ref[...])                           # (BS_PAD, L_PAD)

    # ---- per-task label-range mask + max softmax probability (VPU/EUP/XLU only) ----
    col = jax.lax.broadcasted_iota(jnp.int32, base_logits.shape, 1)
    task_col = jax.lax.broadcasted_iota(jnp.int32, msp_ref.shape, 1)
    msp_acc = jnp.zeros(msp_ref.shape, jnp.float32)
    for t in range(nt):                                        # static unroll (NT small)
        start = starts_ref[t]
        end = ends_ref[t]
        lt = jnp.where((col >= start) & (col < end), base_logits, NEG)
        logits_ref[t] = lt
        m = jnp.max(lt, axis=-1, keepdims=True)
        p = jnp.exp(lt - m)                                    # padded NEG lanes -> exactly 0
        msp_t = (jnp.max(p, axis=-1, keepdims=True)
                 / jnp.sum(p, axis=-1, keepdims=True))         # exact division
        msp_acc = jnp.where(task_col == t, msp_t, msp_acc)     # pack MSP into lane t
    msp_ref[...] = msp_acc


def msp_all_tasks(raw, enc_w, enc_b, pool_w, cls_w, cls_b, task_starts, task_ends):
    rows, hp = raw.shape
    bs, sl = pool_w.shape
    lp = cls_w.shape[1]
    nt = task_starts.shape[0]
    return pl.pallas_call(
        _msp_fused_kernel,
        out_shape=(
            jax.ShapeDtypeStruct((nt, BS_PAD, lp), jnp.float32),   # per-task masked logits
            jax.ShapeDtypeStruct((BS_PAD, hp), jnp.float32),       # pooled (task-independent)
            jax.ShapeDtypeStruct((BS_PAD, LANE), jnp.float32),     # MSP, lane t = task t
        ),
        grid_spec=pltpu.PrefetchScalarGridSpec(
            num_scalar_prefetch=2,
            grid=(1,),                                             # single grid point
            in_specs=[
                pl.BlockSpec((rows, hp), lambda i, s, e: (0, 0)),  # raw token embeds
                pl.BlockSpec((hp, hp), lambda i, s, e: (0, 0)),    # enc_w
                pl.BlockSpec((1, hp), lambda i, s, e: (0, 0)),     # enc_b
                pl.BlockSpec((bs, sl), lambda i, s, e: (0, 0)),    # pooling weights
                pl.BlockSpec((hp, lp), lambda i, s, e: (0, 0)),    # cls_w
                pl.BlockSpec((1, lp), lambda i, s, e: (0, 0)),     # cls_b
            ],
            out_specs=(
                pl.BlockSpec((nt, BS_PAD, lp), lambda i, s, e: (0, 0, 0)),
                pl.BlockSpec((BS_PAD, hp), lambda i, s, e: (0, 0)),
                pl.BlockSpec((BS_PAD, LANE), lambda i, s, e: (0, 0)),
            ),
        ),
        compiler_params=pltpu.CompilerParams(
            dimension_semantics=("arbitrary",)),
    )(task_starts, task_ends, raw, enc_w, enc_b, pool_w, cls_w, cls_b)


# ----------------------- model glue (plain JAX, all inside one jit) -----------------------

def init_params(key):
    ks = jax.random.split(key, 6)
    s = 0.02

    def pad_h(x):  # zero-pad last (hidden) dim to H_PAD — numerics unchanged
        return jnp.pad(x, [(0, 0)] * (x.ndim - 1) + [(0, H_PAD - HIDDEN)])

    word = s * jax.random.normal(ks[0], (VOCAB, HIDDEN), jnp.float32)
    pos = s * jax.random.normal(ks[1], (MAX_POS, HIDDEN), jnp.float32)
    typ = s * jax.random.normal(ks[2], (TYPE_VOCAB, HIDDEN), jnp.float32)
    enc_w = s * jax.random.normal(ks[3], (HIDDEN, HIDDEN), jnp.float32)
    cls_w = s * jax.random.normal(ks[4], (HIDDEN, NUM_LABELS), jnp.float32)
    prompts = s * jax.random.normal(ks[5], (NUM_TASKS, PSL, HIDDEN), jnp.float32)
    return dict(
        word_emb=pad_h(word),
        pos_emb=pad_h(pos),
        type_emb=pad_h(typ),
        enc_w=jnp.pad(enc_w, ((0, H_PAD - HIDDEN), (0, H_PAD - HIDDEN))),
        enc_b=jnp.zeros((1, H_PAD), jnp.float32),
        cls_w=jnp.pad(cls_w, ((0, H_PAD - HIDDEN), (0, L_PAD - NUM_LABELS))),
        cls_b=jnp.zeros((1, L_PAD), jnp.float32),
        # prompts: one (PSL, HIDDEN) prompt per task (nn.ParameterList).  Dead under the
        # synthetic token-wise encoder (prompt rows never reach the masked-mean pool).
        prompts=pad_h(prompts),
    )


@jax.jit
def _msp_core(params, input_ids, attention_mask, token_type_ids):
    """Eval-mode forward core (self.training == False, oracle == False)."""
    bs, sl = input_ids.shape

    # embeddings, computed ONCE (no per-task copies in HBM)
    positions = jnp.arange(sl)
    raw = (params["word_emb"][input_ids]
           + params["pos_emb"][positions][None, :, :]
           + params["type_emb"][token_type_ids])               # (bs, sl, H_PAD)
    raw_flat = raw.reshape(bs * sl, H_PAD)

    # rep_mode == 'avg': per-token weight = mask / count (reciprocal precomputed)
    maskf = attention_mask.astype(jnp.float32)                 # (bs, sl)
    inv_cnt = 1.0 / jnp.maximum(jnp.sum(maskf, axis=-1, keepdims=True), 1e-9)
    pool_w = maskf * inv_cnt                                   # (bs, sl)

    # one fused kernel: encoder + pool + classifier once, per-task mask/MSP inside
    logits_all, pooled_pad, msp_lanes = msp_all_tasks(
        raw_flat, params["enc_w"], params["enc_b"], pool_w,
        params["cls_w"], params["cls_b"], TASK_STARTS, TASK_ENDS)

    # task selection: argmax (first max) == torch loop with strict '>' updates.
    msp_t = msp_lanes[:bs, :NUM_TASKS]                         # (bs, NT)
    ids = jnp.argmax(msp_t, axis=1).astype(jnp.int32)          # (bs,)
    brange = jnp.arange(bs)
    logits = logits_all[ids, brange, :NUM_LABELS]              # (bs, NUM_LABELS)
    pooled = pooled_pad[:bs, :HIDDEN]                          # (bs, HIDDEN)
    return logits, pooled, ids


def msp_forward(params, input_ids, attention_mask, token_type_ids,
                labels=None, task_id=None):
    """Eval-mode forward (self.training == False, oracle == False). Dropout = identity."""
    logits, pooled, ids = _msp_core(params, input_ids, attention_mask, token_type_ids)
    loss = None
    if labels is not None:
        logp = jax.nn.log_softmax(logits, axis=-1)
        loss = -jnp.mean(jnp.take_along_axis(logp, labels[:, None], axis=-1))
    hittings = None
    if task_id is not None:
        hittings = jnp.sum((ids == task_id).astype(jnp.int32))
    return loss, logits, pooled, hittings


# ----------------------- driver -----------------------

if __name__ == "__main__":
    key = jax.random.PRNGKey(0)
    pkey, dkey = jax.random.split(key)
    params = init_params(pkey)

    k1, k2 = jax.random.split(dkey)
    input_ids = jax.random.randint(k1, (BATCH, SEQ), 0, VOCAB, dtype=jnp.int32)
    attention_mask = jnp.ones((BATCH, SEQ), jnp.int32).at[1, SEQ - 2:].set(0)
    token_type_ids = jnp.zeros((BATCH, SEQ), jnp.int32)
    labels = jnp.array([0, 4], jnp.int32)
    task_id = 1

    loss, logits, prelogits, hittings = msp_forward(
        params, input_ids, attention_mask, token_type_ids,
        labels=labels, task_id=task_id)

    jax.block_until_ready((loss, logits, prelogits, hittings))
    assert logits.shape == (BATCH, NUM_LABELS)
    assert prelogits.shape == (BATCH, HIDDEN)
    print("KERNEL_OK")
</pallas_src>

<mosaic_0001>
module attributes {stable_mosaic.version = 11 : i64} {
  func.func @_msp_fused_kernel(%arg0: i32, %arg1: memref<2xi32, #tpu.memory_space<smem>>, %arg2: memref<2xi32, #tpu.memory_space<smem>>, %arg3: memref<16x128xf32, #tpu.memory_space<vmem>>, %arg4: memref<128x128xf32, #tpu.memory_space<vmem>>, %arg5: memref<1x128xf32, #tpu.memory_space<vmem>>, %arg6: memref<2x8xf32, #tpu.memory_space<vmem>>, %arg7: memref<128x128xf32, #tpu.memory_space<vmem>>, %arg8: memref<1x128xf32, #tpu.memory_space<vmem>>, %arg9: memref<2x8x128xf32, #tpu.memory_space<vmem>>, %arg10: memref<8x128xf32, #tpu.memory_space<vmem>>, %arg11: memref<8x128xf32, #tpu.memory_space<vmem>>) attributes {dimension_semantics = [#tpu.dimension_semantics<arbitrary>], iteration_bounds = array<i64: 1>, scalar_prefetch = 2 : i64, scratch_operands = 0 : i64, tpu.core_type = #tpu.core_type<tc>, window_params = [{pipeline_mode = #tpu.pipeline_mode<synchronous>, transform_indices = @transform_0, window_bounds = array<i64: 16, 128>}, {pipeline_mode = #tpu.pipeline_mode<synchronous>, transform_indices = @transform_1, window_bounds = array<i64: 128, 128>}, {pipeline_mode = #tpu.pipeline_mode<synchronous>, transform_indices = @transform_2, window_bounds = array<i64: 1, 128>}, {pipeline_mode = #tpu.pipeline_mode<synchronous>, transform_indices = @transform_3, window_bounds = array<i64: 2, 8>}, {pipeline_mode = #tpu.pipeline_mode<synchronous>, transform_indices = @transform_4, window_bounds = array<i64: 128, 128>}, {pipeline_mode = #tpu.pipeline_mode<synchronous>, transform_indices = @transform_5, window_bounds = array<i64: 1, 128>}, {pipeline_mode = #tpu.pipeline_mode<synchronous>, transform_indices = @transform_6, window_bounds = array<i64: 2, 8, 128>}, {pipeline_mode = #tpu.pipeline_mode<synchronous>, transform_indices = @transform_7, window_bounds = array<i64: 8, 128>}, {pipeline_mode = #tpu.pipeline_mode<synchronous>, transform_indices = @transform_8, window_bounds = array<i64: 8, 128>}]} {
    %c0 = arith.constant 0 : index
    %c0_0 = arith.constant 0 : index
    %0 = vector.load %arg3[%c0, %c0_0] : memref<16x128xf32, #tpu.memory_space<vmem>>, vector<16x128xf32>
    %c0_1 = arith.constant 0 : index
    %c0_2 = arith.constant 0 : index
    %1 = vector.load %arg4[%c0_1, %c0_2] : memref<128x128xf32, #tpu.memory_space<vmem>>, vector<128x128xf32>
    %cst = arith.constant dense<0.000000e+00> : vector<16x128xf32>
    %2 = tpu.matmul %0, %1, %cst {dimension_numbers = #tpu.dot_dimension_numbers<[1], [0], [0], [1], [0, 0, 1, 1], [], []>} : vector<16x128xf32>, vector<128x128xf32>, vector<16x128xf32> -> vector<16x128xf32>
    %c0_3 = arith.constant 0 : index
    %c0_4 = arith.constant 0 : index
    %3 = vector.load %arg5[%c0_3, %c0_4] : memref<1x128xf32, #tpu.memory_space<vmem>>, vector<1x128xf32>
    %4 = vector.broadcast %3 : vector<1x128xf32> to vector<16x128xf32>
    %5 = arith.addf %2, %4 : vector<16x128xf32>
    %6 = math.tanh %5 : vector<16x128xf32>
    %7 = vector.shape_cast %6 : vector<16x128xf32> to vector<2x8x128xf32>
    %c0_5 = arith.constant 0 : index
    %c0_6 = arith.constant 0 : index
    %8 = vector.load %arg6[%c0_5, %c0_6] : memref<2x8xf32, #tpu.memory_space<vmem>>, vector<2x8xf32>
    %9 = vector.shape_cast %8 : vector<2x8xf32> to vector<2x8x1xf32>
    %10 = vector.broadcast %9 : vector<2x8x1xf32> to vector<2x8x128xf32>
    %11 = arith.mulf %7, %10 : vector<2x8x128xf32>
    %cst_7 = arith.constant dense<0.000000e+00> : vector<2x128xf32>
    %12 = vector.multi_reduction <add>, %11, %cst_7 [1] : vector<2x8x128xf32> to vector<2x128xf32>
    %cst_8 = arith.constant 0.000000e+00 : f32
    %13 = vector.broadcast %cst_8 : f32 to vector<6x128xf32>
    %14 = tpu.concatenate %12, %13 in 0 : vector<2x128xf32>, vector<6x128xf32> -> vector<8x128xf32>
    %c0_9 = arith.constant 0 : index
    %c0_10 = arith.constant 0 : index
    %15 = vector.load %arg10[%c0_9, %c0_10] : memref<8x128xf32, #tpu.memory_space<vmem>>, vector<8x128xf32>
    tpu.vector_store %arg10[%c0_9, %c0_10], %14 {strides = array<i32>} : memref<8x128xf32, #tpu.memory_space<vmem>>, vector<8x128xf32>,
    %c0_11 = arith.constant 0 : index
    %c0_12 = arith.constant 0 : index
    %16 = vector.load %arg7[%c0_11, %c0_12] : memref<128x128xf32, #tpu.memory_space<vmem>>, vector<128x128xf32>
    %cst_13 = arith.constant dense<0.000000e+00> : vector<8x128xf32>
    %17 = tpu.matmul %14, %16, %cst_13 {dimension_numbers = #tpu.dot_dimension_numbers<[1], [0], [0], [1], [0, 0, 1, 1], [], []>} : vector<8x128xf32>, vector<128x128xf32>, vector<8x128xf32> -> vector<8x128xf32>
    %c0_14 = arith.constant 0 : index
    %c0_15 = arith.constant 0 : index
    %18 = vector.load %arg8[%c0_14, %c0_15] : memref<1x128xf32, #tpu.memory_space<vmem>>, vector<1x128xf32>
    %19 = vector.broadcast %18 : vector<1x128xf32> to vector<8x128xf32>
    %20 = arith.addf %17, %19 : vector<8x128xf32>
    %21 = tpu.iota {dimensions = array<i32: 1>} : vector<8x128xi32>
    %22 = tpu.iota {dimensions = array<i32: 1>} : vector<8x128xi32>
    %cst_16 = arith.constant 0.000000e+00 : f32
    %23 = vector.broadcast %cst_16 : f32 to vector<8x128xf32>
    %c0_17 = arith.constant 0 : index
    %24 = memref.load %arg1[%c0_17] : memref<2xi32, #tpu.memory_space<smem>>
    %c0_18 = arith.constant 0 : index
    %25 = memref.load %arg2[%c0_18] : memref<2xi32, #tpu.memory_space<smem>>
    %26 = vector.broadcast %24 : i32 to vector<8x128xi32>
    %27 = arith.cmpi sge, %21, %26 : vector<8x128xi32>
    %28 = vector.broadcast %25 : i32 to vector<8x128xi32>
    %29 = arith.cmpi slt, %21, %28 : vector<8x128xi32>
    %30 = arith.andi %27, %29 : vector<8x128xi1>
    %cst_19 = arith.constant -1.000000e+04 : f32
    %31 = vector.broadcast %cst_19 : f32 to vector<8x128xf32>
    %32 = arith.select %30, %20, %31 : vector<8x128xi1>, vector<8x128xf32>
    %c0_20 = arith.constant 0 : index
    %c0_21 = arith.constant 0 : index
    %c0_22 = arith.constant 0 : index
    %33 = vector.load %arg9[%c0_20, %c0_21, %c0_22] : memref<2x8x128xf32, #tpu.memory_space<vmem>>, vector<1x8x128xf32>
    %34 = vector.shape_cast %33 : vector<1x8x128xf32> to vector<8x128xf32>
    %35 = vector.shape_cast %32 : vector<8x128xf32> to vector<1x8x128xf32>
    tpu.vector_store %arg9[%c0_20, %c0_21, %c0_22], %35 {strides = array<i32>} : memref<2x8x128xf32, #tpu.memory_space<vmem>>, vector<1x8x128xf32>,
    %cst_23 = arith.constant dense<0xFF800000> : vector<8xf32>
    %36 = vector.multi_reduction <maximumf>, %32, %cst_23 [1] : vector<8x128xf32> to vector<8xf32>
    %37 = vector.shape_cast %36 : vector<8xf32> to vector<8x1xf32>
    %38 = vector.broadcast %37 : vector<8x1xf32> to vector<8x128xf32>
    %39 = arith.subf %32, %38 : vector<8x128xf32>
    %40 = math.exp %39 : vector<8x128xf32>
    %cst_24 = arith.constant dense<0xFF800000> : vector<8xf32>
    %41 = vector.multi_reduction <maximumf>, %40, %cst_24 [1] : vector<8x128xf32> to vector<8xf32>
    %42 = vector.shape_cast %41 : vector<8xf32> to vector<8x1xf32>
    %cst_25 = arith.constant dense<0.000000e+00> : vector<8xf32>
    %43 = vector.multi_reduction <add>, %40, %cst_25 [1] : vector<8x128xf32> to vector<8xf32>
    %44 = vector.shape_cast %43 : vector<8xf32> to vector<8x1xf32>
    %45 = arith.divf %42, %44 : vector<8x1xf32>
    %c0_i32 = arith.constant 0 : i32
    %46 = vector.broadcast %c0_i32 : i32 to vector<8x128xi32>
    %47 = arith.cmpi eq, %22, %46 : vector<8x128xi32>
    %48 = vector.shape_cast %45 : vector<8x1xf32> to vector<8x1xf32>
    %49 = vector.broadcast %48 : vector<8x1xf32> to vector<8x128xf32>
    %50 = arith.select %47, %49, %23 : vector<8x128xi1>, vector<8x128xf32>
    %c1 = arith.constant 1 : index
    %51 = memref.load %arg1[%c1] : memref<2xi32, #tpu.memory_space<smem>>
    %c1_26 = arith.constant 1 : index
    %52 = memref.load %arg2[%c1_26] : memref<2xi32, #tpu.memory_space<smem>>
    %53 = vector.broadcast %51 : i32 to vector<8x128xi32>
    %54 = arith.cmpi sge, %21, %53 : vector<8x128xi32>
    %55 = vector.broadcast %52 : i32 to vector<8x128xi32>
    %56 = arith.cmpi slt, %21, %55 : vector<8x128xi32>
    %57 = arith.andi %54, %56 : vector<8x128xi1>
    %cst_27 = arith.constant -1.000000e+04 : f32
    %58 = vector.broadcast %cst_27 : f32 to vector<8x128xf32>
    %59 = arith.select %57, %20, %58 : vector<8x128xi1>, vector<8x128xf32>
    %c1_28 = arith.constant 1 : index
    %c0_29 = arith.constant 0 : index
    %c0_30 = arith.constant 0 : index
    %60 = vector.load %arg9[%c1_28, %c0_29, %c0_30] : memref<2x8x128xf32, #tpu.memory_space<vmem>>, vector<1x8x128xf32>
    %61 = vector.shape_cast %60 : vector<1x8x128xf32> to vector<8x128xf32>
    %62 = vector.shape_cast %59 : vector<8x128xf32> to vector<1x8x128xf32>
    tpu.vector_store %arg9[%c1_28, %c0_29, %c0_30], %62 {strides = array<i32>} : memref<2x8x128xf32, #tpu.memory_space<vmem>>, vector<1x8x128xf32>,
    %cst_31 = arith.constant dense<0xFF800000> : vector<8xf32>
    %63 = vector.multi_reduction <maximumf>, %59, %cst_31 [1] : vector<8x128xf32> to vector<8xf32>
    %64 = vector.shape_cast %63 : vector<8xf32> to vector<8x1xf32>
    %65 = vector.broadcast %64 : vector<8x1xf32> to vector<8x128xf32>
    %66 = arith.subf %59, %65 : vector<8x128xf32>
    %67 = math.exp %66 : vector<8x128xf32>
    %cst_32 = arith.constant dense<0xFF800000> : vector<8xf32>
    %68 = vector.multi_reduction <maximumf>, %67, %cst_32 [1] : vector<8x128xf32> to vector<8xf32>
    %69 = vector.shape_cast %68 : vector<8xf32> to vector<8x1xf32>
    %cst_33 = arith.constant dense<0.000000e+00> : vector<8xf32>
    %70 = vector.multi_reduction <add>, %67, %cst_33 [1] : vector<8x128xf32> to vector<8xf32>
    %71 = vector.shape_cast %70 : vector<8xf32> to vector<8x1xf32>
    %72 = arith.divf %69, %71 : vector<8x1xf32>
    %c1_i32 = arith.constant 1 : i32
    %73 = vector.broadcast %c1_i32 : i32 to vector<8x128xi32>
    %74 = arith.cmpi eq, %22, %73 : vector<8x128xi32>
    %75 = vector.shape_cast %72 : vector<8x1xf32> to vector<8x1xf32>
    %76 = vector.broadcast %75 : vector<8x1xf32> to vector<8x128xf32>
    %77 = arith.select %74, %76, %50 : vector<8x128xi1>, vector<8x128xf32>
    %c0_34 = arith.constant 0 : index
    %c0_35 = arith.constant 0 : index
    %78 = vector.load %arg11[%c0_34, %c0_35] : memref<8x128xf32, #tpu.memory_space<vmem>>, vector<8x128xf32>
    tpu.vector_store %arg11[%c0_34, %c0_35], %77 {strides = array<i32>} : memref<8x128xf32, #tpu.memory_space<vmem>>, vector<8x128xf32>,
    return
  }
  func.func @transform_0(%arg0: i32, %arg1: memref<2xi32, #tpu.memory_space<smem>>, %arg2: memref<2xi32, #tpu.memory_space<smem>>) -> (i32, i32) {
    %c0_i32 = arith.constant 0 : i32
    %c0_i32_0 = arith.constant 0 : i32
    %c0_i32_1 = arith.constant 0 : i32
    return %c0_i32, %c0_i32_0 : i32, i32
  }
  func.func @transform_1(%arg0: i32, %arg1: memref<2xi32, #tpu.memory_space<smem>>, %arg2: memref<2xi32, #tpu.memory_space<smem>>) -> (i32, i32) {
    %c0_i32 = arith.constant 0 : i32
    %c0_i32_0 = arith.constant 0 : i32
    %c0_i32_1 = arith.constant 0 : i32
    return %c0_i32, %c0_i32_0 : i32, i32
  }
  func.func @transform_2(%arg0: i32, %arg1: memref<2xi32, #tpu.memory_space<smem>>, %arg2: memref<2xi32, #tpu.memory_space<smem>>) -> (i32, i32) {
    %c0_i32 = arith.constant 0 : i32
    %c0_i32_0 = arith.constant 0 : i32
    %c0_i32_1 = arith.constant 0 : i32
    return %c0_i32, %c0_i32_0 : i32, i32
  }
  func.func @transform_3(%arg0: i32, %arg1: memref<2xi32, #tpu.memory_space<smem>>, %arg2: memref<2xi32, #tpu.memory_space<smem>>) -> (i32, i32) {
    %c0_i32 = arith.constant 0 : i32
    %c0_i32_0 = arith.constant 0 : i32
    %c0_i32_1 = arith.constant 0 : i32
    return %c0_i32, %c0_i32_0 : i32, i32
  }
  func.func @transform_4(%arg0: i32, %arg1: memref<2xi32, #tpu.memory_space<smem>>, %arg2: memref<2xi32, #tpu.memory_space<smem>>) -> (i32, i32) {
    %c0_i32 = arith.constant 0 : i32
    %c0_i32_0 = arith.constant 0 : i32
    %c0_i32_1 = arith.constant 0 : i32
    return %c0_i32, %c0_i32_0 : i32, i32
  }
  func.func @transform_5(%arg0: i32, %arg1: memref<2xi32, #tpu.memory_space<smem>>, %arg2: memref<2xi32, #tpu.memory_space<smem>>) -> (i32, i32) {
    %c0_i32 = arith.constant 0 : i32
    %c0_i32_0 = arith.constant 0 : i32
    %c0_i32_1 = arith.constant 0 : i32
    return %c0_i32, %c0_i32_0 : i32, i32
  }
  func.func @transform_6(%arg0: i32, %arg1: memref<2xi32, #tpu.memory_space<smem>>, %arg2: memref<2xi32, #tpu.memory_space<smem>>) -> (i32, i32, i32) {
    %c0_i32 = arith.constant 0 : i32
    %c0_i32_0 = arith.constant 0 : i32
    %c0_i32_1 = arith.constant 0 : i32
    %c0_i32_2 = arith.constant 0 : i32
    return %c0_i32, %c0_i32_0, %c0_i32_1 : i32, i32, i32
  }
  func.func @transform_7(%arg0: i32, %arg1: memref<2xi32, #tpu.memory_space<smem>>, %arg2: memref<2xi32, #tpu.memory_space<smem>>) -> (i32, i32) {
    %c0_i32 = arith.constant 0 : i32
    %c0_i32_0 = arith.constant 0 : i32
    %c0_i32_1 = arith.constant 0 : i32
    return %c0_i32, %c0_i32_0 : i32, i32
  }
  func.func @transform_8(%arg0: i32, %arg1: memref<2xi32, #tpu.memory_space<smem>>, %arg2: memref<2xi32, #tpu.memory_space<smem>>) -> (i32, i32) {
    %c0_i32 = arith.constant 0 : i32
    %c0_i32_0 = arith.constant 0 : i32
    %c0_i32_1 = arith.constant 0 : i32
    return %c0_i32, %c0_i32_0 : i32, i32
  }
}

</mosaic_0001>

<bundles_post_ra>
// kernel: custom-call.6
= control target key start
LH: loop header
LB: loop body
LE: loop exit
PB: predicated region body
PF: predicated region fallthrough
CT: control target
= control target key end

     0   :  { %s6_s0 = inlined_call_operand.vmem [shape: f32[2,6], index: 0, kind: output, shape index: {}]  }

// kernel: _msp_core.1
= control target key start
LH: loop header
LB: loop body
LE: loop exit
PB: predicated region body
PF: predicated region fallthrough
CT: control target
= control target key end

     0   :  { %s739_s0 = inlined_call_operand.vmem [shape: s32[2], index: 0, kind: input, shape index: {}]   ;;  %s740_s2 = inlined_call_operand.vmem [shape: f32[16,128], index: 2, kind: input, shape index: {}]   ;;  %s741_s3 = inlined_call_operand.vmem [shape: f32[128,128], index: 3, kind: input, shape index: {}]   ;;  %s742_s4 = inlined_call_operand.vmem [shape: f32[1,128], index: 4, kind: input, shape index: {}]   ;;  %s743_s5 = inlined_call_operand.vmem [shape: f32[2,8], index: 5, kind: input, shape index: {}]   ;;  %s744_s6 = inlined_call_operand.vmem [shape: f32[128,128], index: 6, kind: input, shape index: {}]   ;;  %s745_s7 = inlined_call_operand.vmem [shape: f32[1,128], index: 7, kind: input, shape index: {}]   ;;  %s746_s8 = inlined_call_operand.vmem [shape: f32[2,8,128], index: 8, kind: output, shape index: {0}]   ;;  %s747_s9 = inlined_call_operand.vmem [shape: f32[8,128], index: 9, kind: output, shape index: {1}]   ;;  %s748_s10 = inlined_call_operand.vmem [shape: f32[8,128], index: 10, kind: output, shape index: {2}]   ;;  %s749_s1 = inlined_call_operand.vmem [shape: s32[2], index: 1, kind: input, shape index: {}]  }
   0x1   :  { %s16_s15 = sshll.u32 %s739_s0, 4  ;;  %s20_s18 = sshll.u32 %s749_s1, 4  ;;  %s17_s15 = int_to_ptr.vmem [resolvable:$true] %s16_s15  ;;  %s21_s18 = int_to_ptr.vmem [resolvable:$true] %s20_s18 }
   0x2   :  { %s514_s19 = scalar_lea.vmem %s17_s15, 16  ;;  %p519_p1 = scmp.lt.s32.totalorder %s17_s15, %s17_s15 }
   0x3   :  { %p515_p0 = scmp.ne.s32.totalorder %s17_s15, %s514_s19  ;;  %p520_p2 = scmp.lt.s32.totalorder %s514_s19, %s514_s19 }
   0x5   :  { %p521_p3 = por %p520_p2, %p519_p1 }
   0x7   :  { %p522_p4 = pnand %p521_p3, %p515_p0 }
   0x9   :  { %525 = shalt.err (!%p522_p4)  }
   0xa   :  { %s540_s20 = smov [#allocation3]   ;;  %s526_s21 = scalar_lea.vmem %s21_s18, 16 }
   0xb   :  { %19 = dma.vmem_to_smem %s17_s15, 16, %s540_s20, [#allocation2] }
   0xc   :  { %p527_p5 = scmp.ne.s32.totalorder %s21_s18, %s526_s21  ;;  %p531_p6 = scmp.lt.s32.totalorder %s21_s18, %s21_s18 }
   0xd   :  { %p532_p7 = scmp.lt.s32.totalorder %s526_s21, %s526_s21 }
   0xf   :  { %p533_p8 = por %p532_p7, %p531_p6 }
  0x11   :  { %p534_p9 = pnand %p533_p8, %p527_p5 }
  0x13   :  { %537 = shalt.err (!%p534_p9)  }
  0x14   :  { %s541_s0 = smov [#allocation4]  }
  0x15   :  { %23 = dma.vmem_to_smem %s21_s18, 16, %s541_s0, [#allocation2] }
  0x16   :  { %538 = dma.done.wait [#allocation2], 32 }
  0x17   :  { %539 = vsyncadd [#allocation2], 4294967264 }
  0x18   :  { %25 = sfence }
  0x19   :  { %v40_v0 = vld [vmem:[%s741_s3] sm:$0xff]  ;;  %v41_v1 = vld [vmem:[%s741_s3 + $0x8] sm:$0xff]  ;;  %v42_v2 = vld [vmem:[%s741_s3 + $0x10] sm:$0xff]  ;;  %v141_v3 = vlaneseq  ;;  %v542_v6 = vmov 0.0|0.0   ;;  %vm543_vm0 = vmmov 0   ;;  %v544_v58 = vmov 0.0  }
  0x1a   :  { %v441_v4 = vpack.c.bf16 %v41_v1, %v40_v0  ;;  %v43_v5 = vld [vmem:[%s741_s3 + $0x18] sm:$0xff]  ;;  %473 = vmatprep.subr.bf16.mxu1 %v542_v6  ;;  %v44_v8 = vld [vmem:[%s741_s3 + $0x20] sm:$0xff]  ;;  %v45_v9 = vld [vmem:[%s741_s3 + $0x28] sm:$0xff]  ;;  %438 = vmatprep.mubr.msk.f32.mxu1 %vm543_vm0, %v544_v58  ;;  %vm171_vm1 = vcmask 1041409   ;;  %vm174_vm2 = vcmask 1041408   ;;  %s272_s22 = sld [smem:[#allocation3]] }
  0x1b   :  { %v445_v7 = vpack.c.bf16 %v43_v5, %v42_v2  ;;  %v142_v10 = vshrl.u32 %v141_v3, 7  ;;  %v449_v12 = vpack.c.bf16 %v45_v9, %v44_v8  ;;  %v46_v13 = vld [vmem:[%s741_s3 + $0x30] sm:$0xff]  ;;  %v47_v14 = vld [vmem:[%s741_s3 + $0x38] sm:$0xff]  ;;  %v38_v15 = vld [vmem:[%s740_s2] sm:$0xff]  ;;  %s273_s23 = sld [smem:[#allocation4]]  ;;  %s333_s24 = sld [smem:[#allocation3 + $0x1]] }
  0x1c   :  { %442 = vmatprep.subr.bf16.mxu0 %v441_v4  ;;  %403 = vmatprep.mubr.f32.mxu0 %v38_v15  ;;  %v140_v17 = vld [vmem:[%s743_s5] sm:$0x3]  ;;  %v178_v19 = vld [vmem:[%s744_s6 + $0x8] sm:$0xff]  ;;  %v453_v22 = vpack.c.bf16 %v47_v14, %v46_v13  ;;  %v50_v27 = vld [vmem:[%s741_s3 + $0x50] sm:$0xff] }
  0x1d   :  { %444 = vmatpush3.bf16.msra.mxu0 %v441_v4  ;;  %v143_v11 = vsub.s32 0, %v142_v10  ;;  %v150_v16 = vsub.s32 1, %v142_v10  ;;  %v177_v18 = vld [vmem:[%s744_s6] sm:$0xff]  ;;  %v49_v25 = vld [vmem:[%s741_s3 + $0x48] sm:$0xff]  ;;  %v51_v28 = vld [vmem:[%s741_s3 + $0x58] sm:$0xff] }
  0x1e   :  { %446 = vmatprep.subr.bf16.mxu0 %v445_v7  ;;  %v474_v21 = vpack.c.bf16 %v178_v19, %v177_v18  ;;  %v48_v24 = vld [vmem:[%s741_s3 + $0x40] sm:$0xff]  ;;  %v461_v29 = vpack.c.bf16 %v51_v28, %v50_v27  ;;  %v53_v31 = vld [vmem:[%s741_s3 + $0x68] sm:$0xff]  ;;  %v54_v33 = vld [vmem:[%s741_s3 + $0x70] sm:$0xff] }
  0x1f   :  { %v144_v20 = vrot.slane %v140_v17, %v143_v11  ;;  %v151_v23 = vrot.slane %v140_v17, %v150_v16  ;;  %v457_v26 = vpack.c.bf16 %v49_v25, %v48_v24  ;;  %v52_v30 = vld [vmem:[%s741_s3 + $0x60] sm:$0xff]  ;;  %v55_v34 = vld [vmem:[%s741_s3 + $0x78] sm:$0xff]  ;;  %v39_v36 = vld [vmem:[%s740_s2 + $0x8] sm:$0xff]  ;;  %s334_s2 = sld [smem:[#allocation4 + $0x1]] }
  0x20   :  { %475 = vmatpush3.bf16.msra.mxu1 %v474_v21  ;;  %v465_v32 = vpack.c.bf16 %v53_v31, %v52_v30  ;;  %v469_v35 = vpack.c.bf16 %v55_v34, %v54_v33  ;;  %v179_v37 = vld [vmem:[%s744_s6 + $0x10] sm:$0xff]  ;;  %v180_v38 = vld [vmem:[%s744_s6 + $0x18] sm:$0xff]  ;;  %v181_v40 = vld [vmem:[%s744_s6 + $0x20] sm:$0xff]  ;;  %v271_v21 = vand.u32 127, %v141_v3 }
  0x21   :  { %448 = vmatpush3.bf16.msra.mxu0 %v445_v7  ;;  %146 = vbcast.lane.b32.xlu0 %v144_v20, 256  ;;  %v477_v39 = vpack.c.bf16 %v180_v38, %v179_v37  ;;  %v182_v41 = vld [vmem:[%s744_s6 + $0x28] sm:$0xff]  ;;  %v183_v43 = vld [vmem:[%s744_s6 + $0x30] sm:$0xff]  ;;  %v184_v44 = vld [vmem:[%s744_s6 + $0x38] sm:$0xff]  ;;  %v296_v24 = vstv %s333_s24 }
  0x22   :  { %450 = vmatprep.subr.bf16.mxu0 %v449_v12  ;;  %476 = vmatprep.subr.bf16.mxu1 %v542_v6  ;;  %v480_v42 = vpack.c.bf16 %v182_v41, %v181_v40  ;;  %v483_v45 = vpack.c.bf16 %v184_v44, %v183_v43  ;;  %v185_v46 = vld [vmem:[%s744_s6 + $0x40] sm:$0xff]  ;;  %v186_v47 = vld [vmem:[%s744_s6 + $0x48] sm:$0xff]  ;;  %v187_v49 = vld [vmem:[%s744_s6 + $0x50] sm:$0xff]  ;;  %vm297_vm5 = vcmp.ge.s32.totalorder %v271_v21, %v296_v24  ;;  %vm292_vm9 = vcmp.eq.s32.totalorder %v271_v21, 0 }
  0x23   :  { %v486_v48 = vpack.c.bf16 %v186_v47, %v185_v46  ;;  %v188_v50 = vld [vmem:[%s744_s6 + $0x58] sm:$0xff]  ;;  %v189_v52 = vld [vmem:[%s744_s6 + $0x60] sm:$0xff]  ;;  %v190_v53 = vld [vmem:[%s744_s6 + $0x68] sm:$0xff]  ;;  %vm315_vm10 = vcmp.eq.s32.totalorder %v271_v21, 1 }
  0x24   :  { %478 = vmatpush3.bf16.msra.mxu1 %v477_v39  ;;  %v489_v51 = vpack.c.bf16 %v188_v50, %v187_v49  ;;  %v492_v54 = vpack.c.bf16 %v190_v53, %v189_v52  ;;  %v191_v55 = vld [vmem:[%s744_s6 + $0x70] sm:$0xff]  ;;  %v192_v56 = vld [vmem:[%s744_s6 + $0x78] sm:$0xff]  ;;  %v330_v59 = vld [vmem:[%s742_s4] ss:$0 sm:$0xff] }
  0x25   :  { %452 = vmatpush3.bf16.msra.mxu0 %v449_v12  ;;  %153 = vbcast.lane.b32.xlu0 %v151_v23, 256  ;;  %v495_v57 = vpack.c.bf16 %v192_v56, %v191_v55  ;;  %v276_v23 = vstv %s273_s23  ;;  %v298_v25 = vstv %s334_s2 }
  0x26   :  { %454 = vmatprep.subr.bf16.mxu0 %v453_v22  ;;  %479 = vmatprep.subr.bf16.mxu1 %v542_v6  ;;  %vm277_vm4 = vcmp.lt.s32.totalorder %v271_v21, %v276_v23  ;;  %vm299_vm6 = vcmp.lt.s32.totalorder %v271_v21, %v298_v25 }
  0x27   :  { %vm300_vm8 = vmand %vm297_vm5, %vm299_vm6 }
  0x28   :  { %481 = vmatpush3.bf16.msra.mxu1 %v480_v42 }
  0x29   :  { %456 = vmatpush3.bf16.msra.mxu0 %v453_v22  ;;  %482 = vmatprep.subr.bf16.mxu1 %v542_v6  ;;  %v274_v22 = vstv %s272_s22 }
  0x2a   :  { %458 = vmatprep.subr.bf16.mxu0 %v457_v26  ;;  %vm275_vm3 = vcmp.ge.s32.totalorder %v271_v21, %v274_v22 }
  0x2b   :  { %vm278_vm7 = vmand %vm275_vm3, %vm277_vm4 }
  0x2c   :  { %484 = vmatpush3.bf16.msra.mxu1 %v483_v45 }
  0x2d   :  { %460 = vmatpush3.bf16.msra.mxu0 %v457_v26  ;;  %485 = vmatprep.subr.bf16.mxu1 %v542_v6  ;;  %v331_v26 = vld [vmem:[%s745_s7] ss:$0 sm:$0xff] }
  0x2e   :  { %462 = vmatprep.subr.bf16.mxu0 %v461_v29 }
  0x30   :  { %487 = vmatpush3.bf16.msra.mxu1 %v486_v48 }
  0x31   :  { %464 = vmatpush3.bf16.msra.mxu0 %v461_v29  ;;  %488 = vmatprep.subr.bf16.mxu1 %v542_v6 }
  0x32   :  { %466 = vmatprep.subr.bf16.mxu0 %v465_v32 }
  0x34   :  { %490 = vmatpush3.bf16.msra.mxu1 %v489_v51 }
  0x35   :  { %468 = vmatpush3.bf16.msra.mxu0 %v465_v32  ;;  %491 = vmatprep.subr.bf16.mxu1 %v542_v6 }
  0x36   :  { %470 = vmatprep.subr.bf16.mxu0 %v469_v35 }
  0x38   :  { %493 = vmatpush3.bf16.msra.mxu1 %v492_v54 }
  0x39   :  { %472 = vmatpush3.bf16.msra.mxu0 %v469_v35  ;;  %494 = vmatprep.subr.bf16.mxu1 %v542_v6 }
  0x3c   :  { %404 = vmatmul.mubr.f32.vlgmr.msra.gmra.mrb[0].mxu0 %v39_v36  ;;  %496 = vmatpush3.bf16.msra.mxu1 %v495_v57 }
  0x93   :  { %v147_v0 = vpop.permute.xlu0 %146 }
  0x97   :  { %v154_v1 = vpop.permute.xlu0 %153 }
 0x10f   :  { %v405_v60 = vpop.f32.mrb[0].mxu0 }
 0x110   :  { %v135_v61 = vadd.f32 %v405_v60, %v330_v59  ;;  %v129_v62 = vpop.f32.mrb[1].mxu0 }
 0x111   :  { %v130_v63 = vadd.f32 %v330_v59, %v129_v62 }
 0x112   :  { %502 = vtanh.f32 %v135_v61 }
 0x113   :  { %504 = vtanh.f32 %v130_v63 }
 0x11c   :  { %v503_v2 = vpop.eup %502 }
 0x11d   :  { %v505_v4 = vpop.eup %504  ;;  %v156_v5 = vmul.f32 %v503_v2, %v154_v1 }
 0x11e   :  { %v155_v6 = vmul.f32 %v505_v4, %v147_v0 }
 0x11f   :  { %v163_v7 = vrot.slane %v156_v5, 4 }
 0x120   :  { %v157_v8 = vrot.slane %v155_v6, 4 }
 0x121   :  { %v164_v9 = vadd.f32 %v163_v7, %v156_v5 }
 0x122   :  { %v158_v10 = vadd.f32 %v157_v8, %v155_v6 }
 0x123   :  { %v165_v11 = vrot.slane %v164_v9, 2 }
 0x124   :  { %v159_v12 = vrot.slane %v158_v10, 2 }
 0x125   :  { %v166_v13 = vadd.f32 %v165_v11, %v164_v9 }
 0x126   :  { %v160_v14 = vadd.f32 %v159_v12, %v158_v10 }
 0x127   :  { %v167_v15 = vrot.slane %v166_v13, 1 }
 0x128   :  { %v161_v16 = vrot.slane %v160_v14, 1 }
 0x129   :  { %v168_v17 = vadd.f32 %v167_v15, %v166_v13 }
 0x12a   :  { %v162_v18 = vadd.f32 %v161_v16, %v160_v14 }
 0x12c   :  { %v172_v19 = vsel %vm171_vm1, %v168_v17, %v162_v18 }
 0x12d   :  { %v175_v20 = vsel %vm174_vm2, %v172_v19, 0.0  ;;  %439 = vmatmul.mubr.msk.f32.vlgmr.msra.gmra.mrb[0].mxu1 %vm174_vm2, %v172_v19 }
 0x12e   :  { %176 = vst [vmem:[%s747_s9] sm:$0xff] %v175_v20 }
 0x200   :  { %v266_v27 = vpop.f32.mrb[0].mxu1 }
 0x201   :  { %v267_v28 = vadd.f32 %v331_v26, %v266_v27  ;;  %v440_v29 = vpop.f32.mrb[1].mxu1 }
 0x203   :  { %v279_v30 = vsel %vm278_vm7, %v267_v28, -10000.0  ;;  %v301_v31 = vsel %vm300_vm8, %v267_v28, -10000.0 }
 0x204   :  { %281 = vmax.xlane.f32.xlu1 %v279_v30  ;;  %280 = vst [vmem:[%s746_s8] sm:$0xff] %v279_v30  ;;  %335 = vst [vmem:[%s746_s8 + $0x8] sm:$0xff] %v301_v31 }
 0x208   :  { %304 = vmax.xlane.f32.xlu1 %v301_v31 }
 0x291   :  { %v282_v3 = vpop.xlane.xlu1 %281 }
 0x292   :  { %v283_v32 = vsub.f32 %v279_v30, %v282_v3 }
 0x294   :  { %v284_v33 = vmul.f32 1.442695, %v283_v32 }
 0x295   :  { %v305_v34 = vpop.xlane.xlu1 %304 }
 0x296   :  { %506 = vpow2.f32 %v284_v33  ;;  %v306_v35 = vsub.f32 %v301_v31, %v305_v34 }
 0x298   :  { %v307_v36 = vmul.f32 1.442695, %v306_v35 }
 0x29a   :  { %508 = vpow2.f32 %v307_v36 }
 0x2a0   :  { %v507_v37 = vpop.eup %506 }
 0x2a1   :  { %288 = vadd.xlane.f32.xlu0 %v507_v37 }
 0x2a4   :  { %v509_v38 = vpop.eup %508 }
 0x2a5   :  { %311 = vadd.xlane.f32.xlu1 %v509_v38 }
 0x2a9   :  { %286 = vmax.xlane.f32.xlu1 %v507_v37 }
 0x2ad   :  { %309 = vmax.xlane.f32.xlu1 %v509_v38 }
 0x32e   :  { %v289_v39 = vpop.xlane.xlu0 %288 }
 0x32f   :  { %510 = vrcp.f32 %v289_v39 }
 0x332   :  { %v312_v40 = vpop.xlane.xlu1 %311 }
 0x333   :  { %512 = vrcp.f32 %v312_v40 }
 0x336   :  { %v287_v41 = vpop.xlane.xlu1 %286 }
 0x339   :  { %v511_v42 = vpop.eup %510 }
 0x33a   :  { %v291_v43 = vmul.f32 %v511_v42, %v287_v41  ;;  %v310_v45 = vpop.xlane.xlu1 %309 }
 0x33c   :  { %v293_v47 = vsel %vm292_vm9, %v291_v43, 0.0 }
 0x33d   :  { %v513_v44 = vpop.eup %512 }
 0x33e   :  { %v314_v46 = vmul.f32 %v513_v44, %v310_v45 }
 0x340   :  { %v316_v48 = vsel %vm315_vm10, %v314_v46, %v293_v47 }
 0x341   :  { %317 = vst [vmem:[%s748_s10] sm:$0xff] %v316_v48 }

</bundles_post_ra>
